<compile_context>
chip_gen: v5e
topology: v5e:2x2
jax: 0.10.0
libtpu: 0.0.40
codegen_flags: <defaults>
</compile_context>

<pallas_src>
import functools
import math

import jax
import jax.numpy as jnp
from jax.experimental import pallas as pl
from jax.experimental.pallas import tpu as pltpu

_VMEM_LIMIT_BYTES = 32 * 1024 * 1024   # safe on v5e/v6e/v7x, ample headroom
_MAX_BLOCK_BYTES = 4 * 1024 * 1024     # per-block cap before tiling the lane dim


def _pick_tile(dim: int) -> int:
    """Largest lane-aligned tile (multiple of 128, <= 512) dividing `dim`, else full."""
    for t in (512, 256, 128):
        if dim % t == 0:
            return t
    return dim  # full extent is always a legal block size


# ---------------------------------------------------------------------------
# kernels
# ---------------------------------------------------------------------------
def _leading_swap_kernel(x_ref, o_ref, *, d0, d1):
    # Both swapped dims are major and the block size on d1 is 1, so this is a
    # pure vreg-row reorder (lanes/sublanes untouched).
    v = x_ref[...]
    if d1 == d0 + 1:
        o_ref[...] = v.reshape(o_ref.shape)   # adjacent dims: pure shape cast
    else:
        o_ref[...] = jnp.swapaxes(v, d0, d1)  # general leading-dim reorder


def _minor_swap_kernel(x_ref, o_ref):
    # Batched 2-D transpose of the last two dims (XLU path), one batch row per block.
    o_ref[...] = jnp.swapaxes(x_ref[...], -2, -1)


def _sublane_major_swap_kernel(x_ref, o_ref):
    # x_ref: (P, R, tl) -> o_ref: (R, P, tl); lane dim untouched.
    # TODO(synk): relies on Mosaic sublane<->major relayout support
    # (pltpu.einshape("mhd->hmd", ...) is the documented alternative); this
    # mixed path is not exercised by the demo below.
    o_ref[...] = jnp.swapaxes(x_ref[...], 0, 1)


# ---------------------------------------------------------------------------
# wrappers
# ---------------------------------------------------------------------------
def _leading_dim_transpose(x, d0, d1, out_shape):
    """Swap two dims that are both outside the last two (pure data movement)."""
    nd = x.ndim
    L = x.shape[-1]

    in_block = list(x.shape)
    in_block[d1] = 1
    out_block = list(out_shape)
    out_block[d0] = 1

    # Fat blocks: full extent on every non-swapped dim; tile the lane dim only
    # if a single block would exceed the per-block VMEM budget.
    tl = L
    if math.prod(in_block) * x.dtype.itemsize > _MAX_BLOCK_BYTES:
        t = _pick_tile(L)
        if t < L:
            tl = t
    in_block[-1] = tl
    out_block[-1] = tl

    # Grid over the input's d1 (== output's d0): consecutive steps write
    # contiguous output slabs.
    grid = (x.shape[d1], L // tl)

    def in_map(i, j):
        idx = [0] * nd
        idx[d1] = i
        idx[nd - 1] = j
        return tuple(idx)

    def out_map(i, j):
        idx = [0] * nd
        idx[d0] = i
        idx[nd - 1] = j
        return tuple(idx)

    return pl.pallas_call(
        functools.partial(_leading_swap_kernel, d0=d0, d1=d1),
        out_shape=jax.ShapeDtypeStruct(out_shape, x.dtype),
        grid=grid,
        in_specs=[pl.BlockSpec(tuple(in_block), in_map)],
        out_specs=pl.BlockSpec(tuple(out_block), out_map),
        compiler_params=pltpu.CompilerParams(
            dimension_semantics=("parallel", "parallel"),
            vmem_limit_bytes=_VMEM_LIMIT_BYTES),
    )(x)


def _minor_dim_transpose(x):
    """Swap the last two dims, tiled into lane-dense blocks for pipelining."""
    *lead, M, N = x.shape
    B = math.prod(lead) if lead else 1
    x3 = x.reshape(B, M, N)          # leading-dim reshape only (free)
    tm = _pick_tile(M)
    tn = _pick_tile(N)
    # TODO(synk): when M or N < 128 the output tile is lane-narrow (masked
    # stores); folding leading dims into a lane-dense output slab would need an
    # in-kernel minor-dim reshape and is left out.
    grid = (B, M // tm, N // tn)
    out3 = pl.pallas_call(
        _minor_swap_kernel,
        out_shape=jax.ShapeDtypeStruct((B, N, M), x.dtype),
        grid=grid,
        in_specs=[pl.BlockSpec((1, tm, tn), lambda b, i, j: (b, i, j))],
        out_specs=pl.BlockSpec((1, tn, tm), lambda b, i, j: (b, j, i)),
        compiler_params=pltpu.CompilerParams(
            dimension_semantics=("parallel", "parallel", "parallel"),
            vmem_limit_bytes=_VMEM_LIMIT_BYTES),
    )(x3)
    return out3.reshape(*lead, N, M)


def _major_sublane_transpose(x, d0):
    """Swap a major dim with the second-to-last (sublane) dim, tiled over lanes."""
    nd = x.ndim
    dsub = nd - 2
    P, R, L = x.shape[d0], x.shape[dsub], x.shape[-1]
    out_shape = list(x.shape)
    out_shape[d0], out_shape[dsub] = R, P

    other = [a for a in range(nd - 2) if a != d0]
    tl = _pick_tile(L)
    grid = tuple(x.shape[a] for a in other) + (L // tl,)

    in_block = [None] * nd           # squeeze the untouched leading dims
    out_block = [None] * nd
    in_block[d0], in_block[dsub], in_block[-1] = P, R, tl
    out_block[d0], out_block[dsub], out_block[-1] = R, P, tl

    def idx_map(*g):
        idx = [0] * nd
        for gi, a in zip(g[:-1], other):
            idx[a] = gi
        idx[nd - 1] = g[-1]
        return tuple(idx)

    return pl.pallas_call(
        _sublane_major_swap_kernel,
        out_shape=jax.ShapeDtypeStruct(tuple(out_shape), x.dtype),
        grid=grid,
        in_specs=[pl.BlockSpec(tuple(in_block), idx_map)],
        out_specs=pl.BlockSpec(tuple(out_block), idx_map),
        compiler_params=pltpu.CompilerParams(
            dimension_semantics=("parallel",) * len(grid),
            vmem_limit_bytes=_VMEM_LIMIT_BYTES),
    )(x)


def _major_lane_transpose(x, d0):
    """Swap a major dim with the last (lane) dim via three supported passes."""
    # swap(d0, nd-1) == swap(nd-2, nd-1) o swap(d0, nd-2) o swap(nd-2, nd-1)
    # TODO(synk): a fused single-pass kernel would avoid the 3x HBM traffic but
    # needs an in-kernel lane<->major relayout.
    y = _minor_dim_transpose(x)
    z = _major_sublane_transpose(y, d0)
    return _minor_dim_transpose(z)


def pallas_transpose(x, dim0: int, dim1: int):
    """Pallas equivalent of torch.Tensor.transpose(dim0, dim1)."""
    nd = x.ndim
    d0, d1 = dim0 % nd, dim1 % nd
    if d0 == d1:
        return x                                    # identity: no kernel, no copy
    d0, d1 = min(d0, d1), max(d0, d1)

    perm = list(range(nd))
    perm[d0], perm[d1] = perm[d1], perm[d0]
    out_shape = tuple(x.shape[p] for p in perm)

    if d1 < nd - 2:                                 # both swapped dims are major
        return _leading_dim_transpose(x, d0, d1, out_shape)
    if d0 == nd - 2 and d1 == nd - 1:               # the two minor dims
        return _minor_dim_transpose(x)
    if d1 == nd - 2:                                # major <-> sublane
        return _major_sublane_transpose(x, d0)
    return _major_lane_transpose(x, d0)             # major <-> lane


if __name__ == "__main__":
    key = jax.random.PRNGKey(0)
    # (batch=2, heads=4, seq=128, head_dim=128): lane-dense on both minor dims.
    x = jax.random.normal(key, (2, 4, 128, 128), dtype=jnp.float32)

    # Identity (dim0 == dim1): no kernel launched, input returned as-is.
    y0 = pallas_transpose(x, 1, 1)
    jax.block_until_ready(y0)
    assert y0.shape == x.shape
    assert bool(jnp.array_equal(y0, x))

    # Major-dim swap (batch <-> heads): fat blocks, one grid step per head.
    y1 = pallas_transpose(x, 0, 1)
    jax.block_until_ready(y1)
    assert y1.shape == (4, 2, 128, 128)
    assert bool(jnp.array_equal(y1, jnp.swapaxes(x, 0, 1)))

    # Minor-dim swap (seq <-> head_dim): tiled, lane-dense 128x128 blocks.
    y2 = pallas_transpose(x, 2, 3)
    jax.block_until_ready(y2)
    assert y2.shape == (2, 4, 128, 128)
    assert bool(jnp.array_equal(y2, jnp.swapaxes(x, 2, 3)))

    # 2-D input exercises the minor-swap path with no leading dims.
    x2 = jax.random.normal(jax.random.PRNGKey(0), (128, 256), dtype=jnp.float32)
    y3 = pallas_transpose(x2, -2, -1)
    jax.block_until_ready(y3)
    assert y3.shape == (256, 128)
    assert bool(jnp.array_equal(y3, x2.T))

    print("KERNEL_OK")
</pallas_src>

<mosaic_0001>
module attributes {stable_mosaic.version = 11 : i64} {
  func.func @_leading_swap_kernel(%arg0: i32, %arg1: i32, %arg2: memref<2x1x128x128xf32, #tpu.memory_space<vmem>>, %arg3: memref<1x2x128x128xf32, #tpu.memory_space<vmem>>) attributes {dimension_semantics = [#tpu.dimension_semantics<parallel>, #tpu.dimension_semantics<parallel>], iteration_bounds = array<i64: 4, 1>, scalar_prefetch = 0 : i64, scratch_operands = 0 : i64, tpu.core_type = #tpu.core_type<tc>, window_params = [{transform_indices = @transform_0, window_bounds = array<i64: 2, 1, 128, 128>}, {transform_indices = @transform_1, window_bounds = array<i64: 1, 2, 128, 128>}]} {
    %c0 = arith.constant 0 : index
    %c0_0 = arith.constant 0 : index
    %c0_1 = arith.constant 0 : index
    %c0_2 = arith.constant 0 : index
    %0 = vector.load %arg2[%c0, %c0_0, %c0_1, %c0_2] : memref<2x1x128x128xf32, #tpu.memory_space<vmem>>, vector<2x1x128x128xf32>
    %1 = vector.shape_cast %0 : vector<2x1x128x128xf32> to vector<1x2x128x128xf32>
    %c0_3 = arith.constant 0 : index
    %c0_4 = arith.constant 0 : index
    %c0_5 = arith.constant 0 : index
    %c0_6 = arith.constant 0 : index
    %2 = vector.load %arg3[%c0_3, %c0_4, %c0_5, %c0_6] : memref<1x2x128x128xf32, #tpu.memory_space<vmem>>, vector<1x2x128x128xf32>
    tpu.vector_store %arg3[%c0_3, %c0_4, %c0_5, %c0_6], %1 {strides = array<i32>} : memref<1x2x128x128xf32, #tpu.memory_space<vmem>>, vector<1x2x128x128xf32>,
    return
  }
  func.func @transform_0(%arg0: i32, %arg1: i32) -> (i32, i32, i32, i32) {
    %c0_i32 = arith.constant 0 : i32
    %c0_i32_0 = arith.constant 0 : i32
    %c0_i32_1 = arith.constant 0 : i32
    return %c0_i32, %arg0, %c0_i32_0, %arg1 : i32, i32, i32, i32
  }
  func.func @transform_1(%arg0: i32, %arg1: i32) -> (i32, i32, i32, i32) {
    %c0_i32 = arith.constant 0 : i32
    %c0_i32_0 = arith.constant 0 : i32
    %c0_i32_1 = arith.constant 0 : i32
    return %arg0, %c0_i32, %c0_i32_0, %arg1 : i32, i32, i32, i32
  }
}

</mosaic_0001>

<bundles_post_ra>
// kernel: tpu_custom_call.1
= control target key start
LH: loop header
LB: loop body
LE: loop exit
PB: predicated region body
PF: predicated region fallthrough
CT: control target
= control target key end

     0   :  { %6 = vsyncpa [#allocation3], 0  ;;  %s739_s0 = inlined_call_operand.hbm [shape: f32[2,4,128,128], index: 0, kind: input, shape index: {}]   ;;  %s740_s1 = inlined_call_operand.hbm [shape: f32[4,2,128,128], index: 1, kind: output, shape index: {}]  }
   0x1   :  { %8 = vsyncpa [#allocation3 + $0x1], 0 }
   0x2   :  { %9 = vsyncpa [#allocation4], 0 }
   0x3   :  { %11 = vsyncpa [#allocation4 + $0x1], 0  ;;  %s538_s6 = smov 0   ;;  %s540_s7 = smov 0  }
   0x4   :  { %s542_s8 = smov 0   ;;  %s544_s9 = smov 0  }
   0x5   :  { %s546_s10 = smov 0   ;;  %s548_s11 = smov 0  }
   0x6 LB: > { %s345_s12 = sadd.s32 4294967295, %s518_s11   ;;  %s346_s13 = sadd.s32 4294967294, %s518_s11   ;;  %s518_s11 = sphi %s548_s11, %s17_s11   ;;  %s514_s10 = sphi %s546_s10, %s749_s10   ;;  %s510_s9 = sphi %s544_s9, %s748_s9   ;;  %s506_s8 = sphi %s542_s8, %s747_s8   ;;  %s502_s7 = sphi %s540_s7, %s746_s7   ;;  %s498_s6 = sphi %s538_s6, %s745_s6  }
   0x7   : > { %s29_s14 = sadd.s32 1, %s514_s10  ;;  %s38_s15 = sadd.s32 1, %s506_s8 }
   0x8   : > { %p31_p0 = scmp.ge.s32.totalorder %s29_s14, 4  ;;  %p45_p1 = scmp.ne.s32.totalorder %s506_s8, %s502_s7 }
   0x9   : > { %p46_p2 = scmp.eq.s32.totalorder %s518_s11, 0  ;;  %p51_p3 = scmp.ne.s32.totalorder %s502_s7, %s498_s6 }
   0xa   : > { %s751_s14 = smov (%p31_p0, %s29_s14), 0  ;;  %p52_p5 = scmp.eq.s32.totalorder %s345_s12, 0 }
   0xb   : > { %p579_p4 = por %p46_p2, %p45_p1  ;;  %s33_s17 = ssub.s32 %s514_s10, %s751_s14 }
   0xc   : > { %p77_p6 = scmp.eq.s32.totalorder %s345_s12, 3  ;;  %p36_p7 = scmp.eq.s32.totalorder %s33_s17, 0 }
   0xd   : > { %p585_p8 = por %p52_p5, %p51_p3  ;;  %p83_p10 = scmp.eq.s32.totalorder %s346_s13, 3 }
   0xe   : > { %p589_p9 = por %p77_p6, %p45_p1  ;;  %p348_p12 = scmp.ge.s32.totalorder %s518_s11, 4 }
   0xf   : > { %s594_s20 = scalar_select %p36_p7, %s506_s8, %s38_s15  }
  0x10   : > { %p596_p11 = por %p83_p10, %p51_p3  ;;  %99 = sbr.rel (%p348_p12) target bundleno = 35 (0x23), region = 16 }
  0x15   : > { %s103_s22 = sand.u32 1, %s506_s8   ;;  %s362_s23 = sshll.u32 %s514_s10, 7 }
  0x16   : > { %s349_s24 = sshll.u32 %s103_s22, 8  ;;  %s113_s27 = scalar_lea.hbm %s739_s0, %s362_s23 }
  0x17   : > { %s364_s28 = scalar_select %p579_p4, [#allocation0], [#allocation8] }
  0x18   : > { %s126_s29 = sshll.u32 %s113_s27, 4  ;;  %s107_s30 = scalar_lea.vmem [#allocation2], %s349_s24  ;;  %s127_s29 = int_to_ptr.hbm [resolvable:$true] %s126_s29 }
  0x19   : > { %s128_s2 = sshll.u32 %s107_s30, 4  ;;  %s118_s3 = sld [smem:[%s364_s28]]   ;;  %s129_s2 = int_to_ptr.vmem [resolvable:$true] %s128_s2 }
  0x1a   : > { %s520_s4 = smov 8192   ;;  %s521_s5 = smov 2048  }
  0x1b   : > { %365 = sst [smem:[#allocation7]] (%p579_p4), %s520_s4  ;;  %s522_s12 = smov 16  }
  0x1c   : > { %366 = sst [smem:[#allocation7 + $0x1]] (%p579_p4), %s521_s5  ;;  %s523_s13 = smov 128  }
  0x1d   : > { %367 = sst [smem:[#allocation7 + $0x2]] (%p579_p4), %s522_s12  ;;  %s524_s23 = smov 8  }
  0x1e   : > { %368 = sst [smem:[#allocation7 + $0x3]] (%p579_p4), %s523_s13  ;;  %s104_s24 = scalar_lea.sflag [#allocation3], %s103_s22 }
  0x1f   : > { %s352_s15 = sshll.u32 %s118_s3, 26  ;;  %369 = sst [smem:[#allocation7 + $0x4]] (%p579_p4), %s523_s13 }
  0x20   : > { %s353_s17 = sadd.s32 134217728, %s352_s15  ;;  %370 = sst [smem:[#allocation7 + $0x5]] (%p579_p4), %s524_s23 }
  0x21   : > { %s525_s25 = smov [#allocation6]  }
  0x22   : > { %371 = dma.general (%p579_p4), %s127_s29, 4096, %s129_s2, %s104_s24, %s525_s25, [#allocation7], %s353_s17, 0  }
  0x23 PF: > { %p354_p13 = scmp.ge.s32.totalorder %s518_s11, 1  ;;  %p149_p0 = scmp.lt.s32.totalorder %s518_s11, 5 }
  0x25   : > { %p150_p1 = pnand %p354_p13, %p149_p0 }
  0x26   : > { %s625_s26 = sand.u32 (!%p150_p1), 1, %s502_s7  }
  0x27   : > { %153 = sbr.rel (%p150_p1) target bundleno = 81 (0x51), region = 24  ;;  %s355_s27 = sshll.u32 (!%p150_p1), %s625_s26, 8 }
  0x28   : > { %s156_s28 = scalar_lea.sflag (!%p150_p1), [#allocation3], %s625_s26  ;;  %s629_s30 = scalar_lea.vmem (!%p150_p1), [#allocation2], %s355_s27 }
  0x2c   : > { %489 = dma.done.wait (%p585_p8), %s156_s28, 4096  }
  0x2d   : > { %491 = vsyncadd (%p585_p8), %s156_s28, 4294963200  ;;  %v179_v0 = vld [vmem:[%s629_s30] sm:$0xff]  ;;  %v180_v1 = vld [vmem:[%s629_s30 + $0x8] sm:$0xff]  ;;  %s638_s16 = scalar_lea.vmem [#allocation5], %s355_s27  ;;  %s363_s18 = sshll.u32 %s510_s9, 8 }
  0x2e   : > { %v181_v2 = vld [vmem:[%s629_s30 + $0x10] sm:$0xff]  ;;  %211 = vst [vmem:[%s638_s16] sm:$0xff] %v179_v0  ;;  %v182_v3 = vld [vmem:[%s629_s30 + $0x18] sm:$0xff]  ;;  %v183_v4 = vld [vmem:[%s629_s30 + $0x20] sm:$0xff]  ;;  %s256_s2 = scalar_lea.hbm %s740_s1, %s363_s18  ;;  %s257_s9 = sshll.u32 %s638_s16, 4  ;;  %s258_s9 = int_to_ptr.vmem [resolvable:$true] %s257_s9 }
  0x2f   : > { %212 = vst [vmem:[%s638_s16 + $0x8] sm:$0xff] %v180_v1  ;;  %v184_v5 = vld [vmem:[%s629_s30 + $0x28] sm:$0xff]  ;;  %v185_v6 = vld [vmem:[%s629_s30 + $0x30] sm:$0xff]  ;;  %v186_v7 = vld [vmem:[%s629_s30 + $0x38] sm:$0xff]  ;;  %s259_s3 = sshll.u32 %s256_s2, 4  ;;  %s244_s4 = scalar_lea.sflag [#allocation4], %s625_s26  ;;  %s260_s3 = int_to_ptr.hbm [resolvable:$true] %s259_s3 }
  0x30   : > { %213 = vst [vmem:[%s638_s16 + $0x10] sm:$0xff] %v181_v2  ;;  %v187_v8 = vld [vmem:[%s629_s30 + $0x40] sm:$0xff]  ;;  %v188_v9 = vld [vmem:[%s629_s30 + $0x48] sm:$0xff]  ;;  %v189_v10 = vld [vmem:[%s629_s30 + $0x50] sm:$0xff]  ;;  %s450_s5 = sshra.s32 %s260_s3, 4  ;;  %s456_s17 = scalar_lea.hbm %s740_s1, 1024  ;;  %s451_s5 = int_to_ptr.hbm [resolvable:$true] %s450_s5 }
  0x31   : > { %214 = vst [vmem:[%s638_s16 + $0x18] sm:$0xff] %v182_v3  ;;  %v190_v11 = vld [vmem:[%s629_s30 + $0x58] sm:$0xff]  ;;  %v191_v12 = vld [vmem:[%s629_s30 + $0x60] sm:$0xff]  ;;  %v192_v13 = vld [vmem:[%s629_s30 + $0x68] sm:$0xff]  ;;  %s452_s12 = scalar_lea.hbm %s451_s5, 256  ;;  %p457_p5 = scmp.lt.s32.totalorder %s451_s5, %s740_s1 }
  0x32   : > { %215 = vst [vmem:[%s638_s16 + $0x20] sm:$0xff] %v183_v4  ;;  %v193_v14 = vld [vmem:[%s629_s30 + $0x70] sm:$0xff]  ;;  %v194_v15 = vld [vmem:[%s629_s30 + $0x78] sm:$0xff]  ;;  %v195_v16 = vld [vmem:[%s629_s30 + $0x80] sm:$0xff]  ;;  %p453_p2 = scmp.ne.s32.totalorder %s451_s5, %s452_s12  ;;  %p458_p6 = scmp.lt.s32.totalorder %s456_s17, %s452_s12 }
  0x33   : > { %216 = vst [vmem:[%s638_s16 + $0x28] sm:$0xff] %v184_v5  ;;  %v196_v17 = vld [vmem:[%s629_s30 + $0x88] sm:$0xff]  ;;  %v197_v18 = vld [vmem:[%s629_s30 + $0x90] sm:$0xff]  ;;  %v198_v19 = vld [vmem:[%s629_s30 + $0x98] sm:$0xff] }
  0x34   : > { %217 = vst [vmem:[%s638_s16 + $0x30] sm:$0xff] %v185_v6  ;;  %v199_v20 = vld [vmem:[%s629_s30 + $0xa0] sm:$0xff]  ;;  %v200_v21 = vld [vmem:[%s629_s30 + $0xa8] sm:$0xff]  ;;  %v201_v22 = vld [vmem:[%s629_s30 + $0xb0] sm:$0xff]  ;;  %p454_p3 = pnand %p453_p2, %p589_p9  ;;  %p459_p7 = por %p458_p6, %p457_p5 }
  0x35   : > { %218 = vst [vmem:[%s638_s16 + $0x38] sm:$0xff] %v186_v7  ;;  %v202_v23 = vld [vmem:[%s629_s30 + $0xb8] sm:$0xff]  ;;  %v203_v24 = vld [vmem:[%s629_s30 + $0xc0] sm:$0xff]  ;;  %v204_v25 = vld [vmem:[%s629_s30 + $0xc8] sm:$0xff] }
  0x36   : > { %219 = vst [vmem:[%s638_s16 + $0x40] sm:$0xff] %v187_v8  ;;  %v205_v26 = vld [vmem:[%s629_s30 + $0xd0] sm:$0xff]  ;;  %v206_v27 = vld [vmem:[%s629_s30 + $0xd8] sm:$0xff]  ;;  %v207_v28 = vld [vmem:[%s629_s30 + $0xe0] sm:$0xff]  ;;  %p455_p4 = pneg %p454_p3 }
  0x37   : > { %220 = vst [vmem:[%s638_s16 + $0x48] sm:$0xff] %v188_v9  ;;  %v208_v29 = vld [vmem:[%s629_s30 + $0xe8] sm:$0xff]  ;;  %v209_v30 = vld [vmem:[%s629_s30 + $0xf0] sm:$0xff]  ;;  %v210_v31 = vld [vmem:[%s629_s30 + $0xf8] sm:$0xff] }
  0x38   : > { %221 = vst [vmem:[%s638_s16 + $0x50] sm:$0xff] %v189_v10  ;;  %p460_p8 = pnand %p459_p7, %p455_p4 }
  0x39   : > { %222 = vst [vmem:[%s638_s16 + $0x58] sm:$0xff] %v190_v11 }
  0x3a   : > { %223 = vst [vmem:[%s638_s16 + $0x60] sm:$0xff] %v191_v12 }
  0x3b   : > { %224 = vst [vmem:[%s638_s16 + $0x68] sm:$0xff] %v192_v13 }
  0x3c   : > { %225 = vst [vmem:[%s638_s16 + $0x70] sm:$0xff] %v193_v14 }
  0x3d   : > { %226 = vst [vmem:[%s638_s16 + $0x78] sm:$0xff] %v194_v15 }
  0x3e   : > { %227 = vst [vmem:[%s638_s16 + $0x80] sm:$0xff] %v195_v16 }
  0x3f   : > { %228 = vst [vmem:[%s638_s16 + $0x88] sm:$0xff] %v196_v17 }
  0x40   : > { %229 = vst [vmem:[%s638_s16 + $0x90] sm:$0xff] %v197_v18 }
  0x41   : > { %230 = vst [vmem:[%s638_s16 + $0x98] sm:$0xff] %v198_v19 }
  0x42   : > { %231 = vst [vmem:[%s638_s16 + $0xa0] sm:$0xff] %v199_v20 }
  0x43   : > { %232 = vst [vmem:[%s638_s16 + $0xa8] sm:$0xff] %v200_v21 }
  0x44   : > { %233 = vst [vmem:[%s638_s16 + $0xb0] sm:$0xff] %v201_v22 }
  0x45   : > { %234 = vst [vmem:[%s638_s16 + $0xb8] sm:$0xff] %v202_v23 }
  0x46   : > { %235 = vst [vmem:[%s638_s16 + $0xc0] sm:$0xff] %v203_v24 }
  0x47   : > { %236 = vst [vmem:[%s638_s16 + $0xc8] sm:$0xff] %v204_v25 }
  0x48   : > { %237 = vst [vmem:[%s638_s16 + $0xd0] sm:$0xff] %v205_v26 }
  0x49   : > { %238 = vst [vmem:[%s638_s16 + $0xd8] sm:$0xff] %v206_v27 }
  0x4a   : > { %239 = vst [vmem:[%s638_s16 + $0xe0] sm:$0xff] %v207_v28 }
  0x4b   : > { %240 = vst [vmem:[%s638_s16 + $0xe8] sm:$0xff] %v208_v29 }
  0x4c   : > { %241 = vst [vmem:[%s638_s16 + $0xf0] sm:$0xff] %v209_v30 }
  0x4d   : > { %242 = vst [vmem:[%s638_s16 + $0xf8] sm:$0xff] %v210_v31 }
  0x4e   : > { %463 = shalt.err (!%p460_p8)
}
  0x4f   : > { %s526_s25 = smov 128   ;;  %s527_s26 = smov 8  }
  0x50   : > { %373 = dma.vmem_to_hbm [thread:$0]  (%p589_p9), %s258_s9, 4096, %s260_s3, %s244_s4, %s526_s25, %s526_s25, %s527_s26  }
  0x51 PF: > { %p379_p10 = scmp.ge.s32.totalorder %s518_s11, 2  ;;  %s274_s27 = sand.u32 1, %s498_s6  }
  0x52   : > { %s275_s28 = scalar_lea.sflag [#allocation4], %s274_s27 }
  0x53   : > { %p376_p12 = pnand %p379_p10, %p596_p11 }
  0x55   : > { %p377_p13 = pneg %p376_p12 }
  0x57   : > { %493 = dma.done.wait (%p377_p13), %s275_s28, 4096  }
  0x58   : > { %495 = vsyncadd (%p377_p13), %s275_s28, 4294963200  ;;  %s17_s11 = sadd.s32 1, %s518_s11   ;;  %s745_s6 = smov %s502_s7 }
  0x59   : > { %p14_p0 = scmp.ge.s32.totalorder %s17_s11, 6   ;;  %s746_s7 = smov %s506_s8 }
  0x5a   : > { %s747_s8 = smov %s594_s20  ;;  %s748_s9 = smov %s514_s10 }
  0x5b   : > { %s749_s10 = smov %s751_s14  ;;  %16 = sbr.rel (!%p14_p0) target bundleno = 6 (0x6), region = 74 }
  0x60   :  { %281 = vsyncpa [#allocation3], 1 }
  0x61   :  { %283 = vsyncpa [#allocation3 + $0x1], 1 }
  0x62   :  { %284 = vsyncpa [#allocation4], 1 }
  0x63   :  { %286 = vsyncpa [#allocation4 + $0x1], 1 }

</bundles_post_ra>
